<compile_context>
chip_gen: v6e
topology: v6e:2x2x1
jax: 0.10.0
libtpu: 0.0.40
codegen_flags: <defaults>
</compile_context>

<pallas_src>
import jax
import jax.numpy as jnp
from jax.experimental import pallas as pl
from jax.experimental.pallas import tpu as pltpu

EPS = 1e-5


def _layernorm(x, w, b, eps=EPS):
    mu = jnp.mean(x, axis=-1, keepdims=True)
    var = jnp.mean((x - mu) ** 2, axis=-1, keepdims=True)
    return (x - mu) * jax.lax.rsqrt(var + eps) * w + b


def recycling_kernel(m_ref, z_ref, xr_ref, xt_ref, sqb_ref,
                     lnm_w_ref, lnm_b_ref, lnz_w_ref, lnz_b_ref, wd_ref,
                     m_out_ref, z_out_ref):
    TR, N, Cz = z_ref.shape
    nb = sqb_ref.shape[-1]

    # ---- LayerNorm of this row-block of the MSA first row ----
    m_out_ref[...] = _layernorm(m_ref[...], lnm_w_ref[...], lnm_b_ref[...])

    # ---- LayerNorm of the pair-embedding block ----
    # (distogram Linear bias already folded into lnz_b by the wrapper)
    z_ln = _layernorm(z_ref[...],
                      lnz_w_ref[...].reshape(1, 1, Cz),
                      lnz_b_ref[...].reshape(1, 1, Cz))

    # ---- pairwise squared distances for this row block ----
    # Exact (a-b)^2 accumulation, identical to the reference arithmetic, so
    # bin membership never flips.  xt is (3, N): lane-dense along N.
    xr = xr_ref[...]            # [TR, 3]
    xt = xt_ref[...]            # [3, N]
    d2 = jnp.zeros((TR, N), jnp.float32)
    for k in range(3):
        diff = xr[:, k:k + 1] - xt[k:k + 1, :]
        d2 = d2 + diff * diff

    # ---- distogram: single compare against telescoped weights, tiny MXU dot
    above = (d2[:, :, None] > sqb_ref[...].reshape(1, 1, nb)).astype(jnp.float32)
    lin = jnp.dot(above.reshape(TR * N, nb), wd_ref[...],
                  preferred_element_type=jnp.float32)

    z_out_ref[...] = z_ln + lin.reshape(TR, N, Cz)


def _vmem_capacity_bytes():
    try:
        return int(pltpu.get_tpu_info().vmem_capacity_bytes)
    except Exception:
        return 64 * 1024 * 1024          # conservative (v7x per-core VMEM)


def _pick_tile_rows(N, Cm, Cz, no_bins, budget_bytes):
    """Largest row tile (multiple of 8, dividing N) whose pipelined working
    set fits the budget, preferring a grid of >= 2 steps (v7x megacore)."""
    def est(tr):
        z_blk = tr * N * Cz * 4
        m_blk = tr * Cm * 4
        mask = tr * N * max(no_bins, 128) * 4     # lane-padded distogram mask
        # z/m in+out double-buffered + resident intermediates (z_ln, lin, sum)
        return 4 * (z_blk + m_blk) + 3 * z_blk + mask

    cands = [d for d in range(8, N + 1, 8) if N % d == 0] or [N]
    best = cands[0]
    for d in cands:
        if est(d) <= budget_bytes and (N // d) >= 2:
            best = d
    return best


def recycling_embedder(m, z, x, params, *, min_bin, max_bin, no_bins, inf,
                       tile_rows=None):
    # `inf` only matters for the two-sided one-hot; the telescoped form used
    # here is equivalent for any finite squared distance (< inf always holds
    # for real coordinates).
    del inf
    N, Cm = m.shape
    Cz = z.shape[-1]
    f32 = jnp.float32

    m = m.astype(f32)
    z = z.astype(f32)
    x = x.astype(f32)

    # ---- wrapper-side constant prep ----
    bins = jnp.linspace(min_bin, max_bin, no_bins, dtype=f32)
    sqb = (bins ** 2).reshape(1, no_bins)
    w = params['lin_w'].astype(f32)                                     # [nb, Cz]
    wd = w - jnp.concatenate([jnp.zeros_like(w[:1]), w[:-1]], axis=0)   # telescoped
    lnz_b_eff = (params['ln_z_b'] + params['lin_b']).reshape(1, Cz).astype(f32)

    vmem_cap = _vmem_capacity_bytes()
    if tile_rows is None:
        tile_rows = _pick_tile_rows(N, Cm, Cz, no_bins, int(vmem_cap * 0.45))
    assert N % tile_rows == 0, "N_res must be divisible by the row tile"
    grid = (N // tile_rows,)

    m_out, z_out = pl.pallas_call(
        recycling_kernel,
        out_shape=(jax.ShapeDtypeStruct((N, Cm), f32),
                   jax.ShapeDtypeStruct((N, N, Cz), f32)),
        grid=grid,
        in_specs=[
            pl.BlockSpec((tile_rows, Cm), lambda i: (i, 0)),         # m rows
            pl.BlockSpec((tile_rows, N, Cz), lambda i: (i, 0, 0)),   # z rows
            pl.BlockSpec((tile_rows, 3), lambda i: (i, 0)),          # x rows
            pl.BlockSpec((3, N), lambda i: (0, 0)),                  # x^T (lane-dense)
            pl.BlockSpec((1, no_bins), lambda i: (0, 0)),            # squared bins
            pl.BlockSpec((1, Cm), lambda i: (0, 0)),                 # ln_m weight
            pl.BlockSpec((1, Cm), lambda i: (0, 0)),                 # ln_m bias
            pl.BlockSpec((1, Cz), lambda i: (0, 0)),                 # ln_z weight
            pl.BlockSpec((1, Cz), lambda i: (0, 0)),                 # ln_z bias + lin bias
            pl.BlockSpec((no_bins, Cz), lambda i: (0, 0)),           # telescoped W
        ],
        out_specs=(
            pl.BlockSpec((tile_rows, Cm), lambda i: (i, 0)),
            pl.BlockSpec((tile_rows, N, Cz), lambda i: (i, 0, 0)),
        ),
        compiler_params=pltpu.CompilerParams(
            dimension_semantics=("parallel",),
            vmem_limit_bytes=min(int(vmem_cap * 0.75), 100 * 1024 * 1024),
        ),
    )(m, z, x, x.T,
      sqb,
      params['ln_m_w'].reshape(1, Cm).astype(f32),
      params['ln_m_b'].reshape(1, Cm).astype(f32),
      params['ln_z_w'].reshape(1, Cz).astype(f32),
      lnz_b_eff,
      wd)

    return m_out, z_out


def reference(m, z, x, params, *, min_bin, max_bin, no_bins, inf):
    """Faithful (two-sided one-hot, un-folded bias) replica of the module."""
    def ln(v, w, b):
        mu = v.mean(-1, keepdims=True)
        var = ((v - mu) ** 2).mean(-1, keepdims=True)
        return (v - mu) / jnp.sqrt(var + EPS) * w + b

    m_u = ln(m, params['ln_m_w'], params['ln_m_b'])
    z_u = ln(z, params['ln_z_w'], params['ln_z_b'])
    bins = jnp.linspace(min_bin, max_bin, no_bins, dtype=x.dtype)
    sqb = bins ** 2
    upper = jnp.concatenate([sqb[1:], jnp.array([inf], dtype=x.dtype)])
    d = jnp.sum((x[..., None, :] - x[..., None, :, :]) ** 2, -1, keepdims=True)
    oh = ((d > sqb) * (d < upper)).astype(x.dtype)
    dlin = oh @ params['lin_w'] + params['lin_b']
    return m_u, z_u + dlin


if __name__ == "__main__":
    # Small shapes consistent with the module's forward signature.
    N_res, C_m, C_z = 16, 32, 16
    min_bin, max_bin, no_bins, inf = 3.25, 20.75, 15, 1e8

    key = jax.random.PRNGKey(0)
    k_m, k_z, k_x, k_w, k_p = jax.random.split(key, 5)

    m = jax.random.normal(k_m, (N_res, C_m), jnp.float32)
    z = jax.random.normal(k_z, (N_res, N_res, C_z), jnp.float32)
    x = jax.random.normal(k_x, (N_res, 3), jnp.float32) * 10.0   # Angstrom-ish

    # Non-trivial parameters (module default is ones/zeros + zero bias; use
    # perturbed values to also exercise the folded-bias / telescoped paths).
    k1, k2, k3, k4, k5 = jax.random.split(k_p, 5)
    params = {
        'ln_m_w': 1.0 + 0.1 * jax.random.normal(k1, (C_m,), jnp.float32),
        'ln_m_b': 0.1 * jax.random.normal(k2, (C_m,), jnp.float32),
        'ln_z_w': 1.0 + 0.1 * jax.random.normal(k3, (C_z,), jnp.float32),
        'ln_z_b': 0.1 * jax.random.normal(k4, (C_z,), jnp.float32),
        'lin_w': jax.random.normal(k_w, (no_bins, C_z), jnp.float32)
                 / jnp.sqrt(float(no_bins)),
        'lin_b': 0.1 * jax.random.normal(k5, (C_z,), jnp.float32),
    }

    m_out, z_out = recycling_embedder(
        m, z, x, params,
        min_bin=min_bin, max_bin=max_bin, no_bins=no_bins, inf=inf)
    jax.block_until_ready((m_out, z_out))

    m_ref, z_ref = reference(m, z, x, params,
                             min_bin=min_bin, max_bin=max_bin,
                             no_bins=no_bins, inf=inf)
    assert jnp.allclose(m_out, m_ref, rtol=1e-5, atol=1e-5)
    assert jnp.allclose(z_out, z_ref, rtol=1e-5, atol=1e-5)

    print("KERNEL_OK")
</pallas_src>

<mosaic_0001>
module attributes {stable_mosaic.version = 11 : i64} {
  func.func @recycling_kernel(%arg0: i32, %arg1: memref<8x32xf32, #tpu.memory_space<vmem>>, %arg2: memref<8x16x16xf32, #tpu.memory_space<vmem>>, %arg3: memref<8x3xf32, #tpu.memory_space<vmem>>, %arg4: memref<3x16xf32, #tpu.memory_space<vmem>>, %arg5: memref<1x15xf32, #tpu.memory_space<vmem>>, %arg6: memref<1x32xf32, #tpu.memory_space<vmem>>, %arg7: memref<1x32xf32, #tpu.memory_space<vmem>>, %arg8: memref<1x16xf32, #tpu.memory_space<vmem>>, %arg9: memref<1x16xf32, #tpu.memory_space<vmem>>, %arg10: memref<15x16xf32, #tpu.memory_space<vmem>>, %arg11: memref<8x32xf32, #tpu.memory_space<vmem>>, %arg12: memref<8x16x16xf32, #tpu.memory_space<vmem>>) attributes {dimension_semantics = [#tpu.dimension_semantics<parallel>], iteration_bounds = array<i64: 2>, scalar_prefetch = 0 : i64, scratch_operands = 0 : i64, tpu.core_type = #tpu.core_type<tc>, window_params = [{transform_indices = @transform_0, window_bounds = array<i64: 8, 32>}, {transform_indices = @transform_1, window_bounds = array<i64: 8, 16, 16>}, {transform_indices = @transform_2, window_bounds = array<i64: 8, 3>}, {pipeline_mode = #tpu.pipeline_mode<synchronous>, transform_indices = @transform_3, window_bounds = array<i64: 3, 16>}, {pipeline_mode = #tpu.pipeline_mode<synchronous>, transform_indices = @transform_4, window_bounds = array<i64: 1, 15>}, {pipeline_mode = #tpu.pipeline_mode<synchronous>, transform_indices = @transform_5, window_bounds = array<i64: 1, 32>}, {pipeline_mode = #tpu.pipeline_mode<synchronous>, transform_indices = @transform_6, window_bounds = array<i64: 1, 32>}, {pipeline_mode = #tpu.pipeline_mode<synchronous>, transform_indices = @transform_7, window_bounds = array<i64: 1, 16>}, {pipeline_mode = #tpu.pipeline_mode<synchronous>, transform_indices = @transform_8, window_bounds = array<i64: 1, 16>}, {pipeline_mode = #tpu.pipeline_mode<synchronous>, transform_indices = @transform_9, window_bounds = array<i64: 15, 16>}, {transform_indices = @transform_10, window_bounds = array<i64: 8, 32>}, {transform_indices = @transform_11, window_bounds = array<i64: 8, 16, 16>}]} {
    %c0 = arith.constant 0 : index
    %c0_0 = arith.constant 0 : index
    %0 = vector.load %arg1[%c0, %c0_0] : memref<8x32xf32, #tpu.memory_space<vmem>>, vector<8x32xf32>
    %c0_1 = arith.constant 0 : index
    %c0_2 = arith.constant 0 : index
    %1 = vector.load %arg6[%c0_1, %c0_2] : memref<1x32xf32, #tpu.memory_space<vmem>>, vector<1x32xf32>
    %c0_3 = arith.constant 0 : index
    %c0_4 = arith.constant 0 : index
    %2 = vector.load %arg7[%c0_3, %c0_4] : memref<1x32xf32, #tpu.memory_space<vmem>>, vector<1x32xf32>
    %cst = arith.constant dense<0.000000e+00> : vector<8xf32>
    %3 = vector.multi_reduction <add>, %0, %cst [1] : vector<8x32xf32> to vector<8xf32>
    %4 = vector.shape_cast %3 : vector<8xf32> to vector<8x1xf32>
    %cst_5 = arith.constant 3.200000e+01 : f32
    %5 = vector.broadcast %cst_5 : f32 to vector<8x1xf32>
    %6 = arith.divf %4, %5 : vector<8x1xf32>
    %7 = vector.broadcast %6 : vector<8x1xf32> to vector<8x32xf32>
    %8 = arith.subf %0, %7 : vector<8x32xf32>
    %9 = arith.mulf %8, %8 : vector<8x32xf32>
    %cst_6 = arith.constant dense<0.000000e+00> : vector<8xf32>
    %10 = vector.multi_reduction <add>, %9, %cst_6 [1] : vector<8x32xf32> to vector<8xf32>
    %11 = vector.shape_cast %10 : vector<8xf32> to vector<8x1xf32>
    %cst_7 = arith.constant 3.200000e+01 : f32
    %12 = vector.broadcast %cst_7 : f32 to vector<8x1xf32>
    %13 = arith.divf %11, %12 : vector<8x1xf32>
    %14 = vector.broadcast %6 : vector<8x1xf32> to vector<8x32xf32>
    %15 = arith.subf %0, %14 : vector<8x32xf32>
    %cst_8 = arith.constant 9.99999974E-6 : f32
    %16 = vector.broadcast %cst_8 : f32 to vector<8x1xf32>
    %17 = arith.addf %13, %16 : vector<8x1xf32>
    %18 = math.rsqrt %17 : vector<8x1xf32>
    %19 = vector.broadcast %18 : vector<8x1xf32> to vector<8x32xf32>
    %20 = arith.mulf %15, %19 : vector<8x32xf32>
    %21 = vector.broadcast %1 : vector<1x32xf32> to vector<8x32xf32>
    %22 = arith.mulf %20, %21 : vector<8x32xf32>
    %23 = vector.broadcast %2 : vector<1x32xf32> to vector<8x32xf32>
    %24 = arith.addf %22, %23 : vector<8x32xf32>
    %c0_9 = arith.constant 0 : index
    %c0_10 = arith.constant 0 : index
    %25 = vector.load %arg11[%c0_9, %c0_10] : memref<8x32xf32, #tpu.memory_space<vmem>>, vector<8x32xf32>
    tpu.vector_store %arg11[%c0_9, %c0_10], %24 {strides = array<i32>} : memref<8x32xf32, #tpu.memory_space<vmem>>, vector<8x32xf32>,
    %c0_11 = arith.constant 0 : index
    %c0_12 = arith.constant 0 : index
    %c0_13 = arith.constant 0 : index
    %26 = vector.load %arg2[%c0_11, %c0_12, %c0_13] : memref<8x16x16xf32, #tpu.memory_space<vmem>>, vector<8x16x16xf32>
    %c0_14 = arith.constant 0 : index
    %c0_15 = arith.constant 0 : index
    %27 = vector.load %arg8[%c0_14, %c0_15] : memref<1x16xf32, #tpu.memory_space<vmem>>, vector<1x16xf32>
    %28 = vector.shape_cast %27 : vector<1x16xf32> to vector<1x1x16xf32>
    %c0_16 = arith.constant 0 : index
    %c0_17 = arith.constant 0 : index
    %29 = vector.load %arg9[%c0_16, %c0_17] : memref<1x16xf32, #tpu.memory_space<vmem>>, vector<1x16xf32>
    %30 = vector.shape_cast %29 : vector<1x16xf32> to vector<1x1x16xf32>
    %cst_18 = arith.constant dense<0.000000e+00> : vector<8x16xf32>
    %31 = vector.multi_reduction <add>, %26, %cst_18 [2] : vector<8x16x16xf32> to vector<8x16xf32>
    %32 = vector.shape_cast %31 : vector<8x16xf32> to vector<8x16x1xf32>
    %cst_19 = arith.constant 1.600000e+01 : f32
    %33 = vector.broadcast %cst_19 : f32 to vector<8x16x1xf32>
    %34 = arith.divf %32, %33 : vector<8x16x1xf32>
    %35 = vector.broadcast %34 : vector<8x16x1xf32> to vector<8x16x16xf32>
    %36 = arith.subf %26, %35 : vector<8x16x16xf32>
    %37 = arith.mulf %36, %36 : vector<8x16x16xf32>
    %cst_20 = arith.constant dense<0.000000e+00> : vector<8x16xf32>
    %38 = vector.multi_reduction <add>, %37, %cst_20 [2] : vector<8x16x16xf32> to vector<8x16xf32>
    %39 = vector.shape_cast %38 : vector<8x16xf32> to vector<8x16x1xf32>
    %cst_21 = arith.constant 1.600000e+01 : f32
    %40 = vector.broadcast %cst_21 : f32 to vector<8x16x1xf32>
    %41 = arith.divf %39, %40 : vector<8x16x1xf32>
    %42 = vector.broadcast %34 : vector<8x16x1xf32> to vector<8x16x16xf32>
    %43 = arith.subf %26, %42 : vector<8x16x16xf32>
    %cst_22 = arith.constant 9.99999974E-6 : f32
    %44 = vector.broadcast %cst_22 : f32 to vector<8x16x1xf32>
    %45 = arith.addf %41, %44 : vector<8x16x1xf32>
    %46 = math.rsqrt %45 : vector<8x16x1xf32>
    %47 = vector.broadcast %46 : vector<8x16x1xf32> to vector<8x16x16xf32>
    %48 = arith.mulf %43, %47 : vector<8x16x16xf32>
    %49 = vector.broadcast %28 : vector<1x1x16xf32> to vector<8x16x16xf32>
    %50 = arith.mulf %48, %49 : vector<8x16x16xf32>
    %51 = vector.broadcast %30 : vector<1x1x16xf32> to vector<8x16x16xf32>
    %52 = arith.addf %50, %51 : vector<8x16x16xf32>
    %c0_23 = arith.constant 0 : index
    %c0_24 = arith.constant 0 : index
    %53 = vector.load %arg3[%c0_23, %c0_24] : memref<8x3xf32, #tpu.memory_space<vmem>>, vector<8x3xf32>
    %c0_25 = arith.constant 0 : index
    %c0_26 = arith.constant 0 : index
    %54 = vector.load %arg4[%c0_25, %c0_26] : memref<3x16xf32, #tpu.memory_space<vmem>>, vector<3x16xf32>
    %cst_27 = arith.constant 0.000000e+00 : f32
    %55 = vector.broadcast %cst_27 : f32 to vector<8x16xf32>
    %56 = vector.extract_strided_slice %53 {offsets = [0, 0], sizes = [8, 1], strides = [1, 1]} : vector<8x3xf32> to vector<8x1xf32>
    %57 = vector.extract_strided_slice %54 {offsets = [0, 0], sizes = [1, 16], strides = [1, 1]} : vector<3x16xf32> to vector<1x16xf32>
    %58 = vector.broadcast %56 : vector<8x1xf32> to vector<8x16xf32>
    %59 = vector.broadcast %57 : vector<1x16xf32> to vector<8x16xf32>
    %60 = arith.subf %58, %59 : vector<8x16xf32>
    %61 = arith.mulf %60, %60 : vector<8x16xf32>
    %62 = arith.addf %55, %61 : vector<8x16xf32>
    %63 = vector.extract_strided_slice %53 {offsets = [0, 1], sizes = [8, 1], strides = [1, 1]} : vector<8x3xf32> to vector<8x1xf32>
    %64 = vector.extract_strided_slice %54 {offsets = [1, 0], sizes = [1, 16], strides = [1, 1]} : vector<3x16xf32> to vector<1x16xf32>
    %65 = vector.broadcast %63 : vector<8x1xf32> to vector<8x16xf32>
    %66 = vector.broadcast %64 : vector<1x16xf32> to vector<8x16xf32>
    %67 = arith.subf %65, %66 : vector<8x16xf32>
    %68 = arith.mulf %67, %67 : vector<8x16xf32>
    %69 = arith.addf %62, %68 : vector<8x16xf32>
    %70 = vector.extract_strided_slice %53 {offsets = [0, 2], sizes = [8, 1], strides = [1, 1]} : vector<8x3xf32> to vector<8x1xf32>
    %71 = vector.extract_strided_slice %54 {offsets = [2, 0], sizes = [1, 16], strides = [1, 1]} : vector<3x16xf32> to vector<1x16xf32>
    %72 = vector.broadcast %70 : vector<8x1xf32> to vector<8x16xf32>
    %73 = vector.broadcast %71 : vector<1x16xf32> to vector<8x16xf32>
    %74 = arith.subf %72, %73 : vector<8x16xf32>
    %75 = arith.mulf %74, %74 : vector<8x16xf32>
    %76 = arith.addf %69, %75 : vector<8x16xf32>
    %77 = vector.shape_cast %76 : vector<8x16xf32> to vector<8x16x1xf32>
    %c0_28 = arith.constant 0 : index
    %c0_29 = arith.constant 0 : index
    %78 = vector.load %arg5[%c0_28, %c0_29] : memref<1x15xf32, #tpu.memory_space<vmem>>, vector<1x15xf32>
    %79 = vector.shape_cast %78 : vector<1x15xf32> to vector<1x1x15xf32>
    %80 = vector.broadcast %77 : vector<8x16x1xf32> to vector<8x16x15xf32>
    %81 = vector.broadcast %79 : vector<1x1x15xf32> to vector<8x16x15xf32>
    %82 = arith.cmpf ogt, %80, %81 : vector<8x16x15xf32>
    %83 = arith.extui %82 : vector<8x16x15xi1> to vector<8x16x15xi32>
    %84 = arith.sitofp %83 : vector<8x16x15xi32> to vector<8x16x15xf32>
    %85 = vector.shape_cast %84 : vector<8x16x15xf32> to vector<128x15xf32>
    %c0_30 = arith.constant 0 : index
    %c0_31 = arith.constant 0 : index
    %86 = vector.load %arg10[%c0_30, %c0_31] : memref<15x16xf32, #tpu.memory_space<vmem>>, vector<15x16xf32>
    %cst_32 = arith.constant dense<0.000000e+00> : vector<128x16xf32>
    %87 = tpu.matmul %85, %86, %cst_32 {dimension_numbers = #tpu.dot_dimension_numbers<[1], [0], [0], [1], [0, 0, 1, 1], [], []>} : vector<128x15xf32>, vector<15x16xf32>, vector<128x16xf32> -> vector<128x16xf32>
    %88 = vector.shape_cast %87 : vector<128x16xf32> to vector<8x16x16xf32>
    %89 = arith.addf %52, %88 : vector<8x16x16xf32>
    %c0_33 = arith.constant 0 : index
    %c0_34 = arith.constant 0 : index
    %c0_35 = arith.constant 0 : index
    %90 = vector.load %arg12[%c0_33, %c0_34, %c0_35] : memref<8x16x16xf32, #tpu.memory_space<vmem>>, vector<8x16x16xf32>
    tpu.vector_store %arg12[%c0_33, %c0_34, %c0_35], %89 {strides = array<i32>} : memref<8x16x16xf32, #tpu.memory_space<vmem>>, vector<8x16x16xf32>,
    return
  }
  func.func @transform_0(%arg0: i32) -> (i32, i32) {
    %c0_i32 = arith.constant 0 : i32
    %c0_i32_0 = arith.constant 0 : i32
    return %arg0, %c0_i32 : i32, i32
  }
  func.func @transform_1(%arg0: i32) -> (i32, i32, i32) {
    %c0_i32 = arith.constant 0 : i32
    %c0_i32_0 = arith.constant 0 : i32
    %c0_i32_1 = arith.constant 0 : i32
    return %arg0, %c0_i32, %c0_i32_0 : i32, i32, i32
  }
  func.func @transform_2(%arg0: i32) -> (i32, i32) {
    %c0_i32 = arith.constant 0 : i32
    %c0_i32_0 = arith.constant 0 : i32
    return %arg0, %c0_i32 : i32, i32
  }
  func.func @transform_3(%arg0: i32) -> (i32, i32) {
    %c0_i32 = arith.constant 0 : i32
    %c0_i32_0 = arith.constant 0 : i32
    %c0_i32_1 = arith.constant 0 : i32
    return %c0_i32, %c0_i32_0 : i32, i32
  }
  func.func @transform_4(%arg0: i32) -> (i32, i32) {
    %c0_i32 = arith.constant 0 : i32
    %c0_i32_0 = arith.constant 0 : i32
    %c0_i32_1 = arith.constant 0 : i32
    return %c0_i32, %c0_i32_0 : i32, i32
  }
  func.func @transform_5(%arg0: i32) -> (i32, i32) {
    %c0_i32 = arith.constant 0 : i32
    %c0_i32_0 = arith.constant 0 : i32
    %c0_i32_1 = arith.constant 0 : i32
    return %c0_i32, %c0_i32_0 : i32, i32
  }
  func.func @transform_6(%arg0: i32) -> (i32, i32) {
    %c0_i32 = arith.constant 0 : i32
    %c0_i32_0 = arith.constant 0 : i32
    %c0_i32_1 = arith.constant 0 : i32
    return %c0_i32, %c0_i32_0 : i32, i32
  }
  func.func @transform_7(%arg0: i32) -> (i32, i32) {
    %c0_i32 = arith.constant 0 : i32
    %c0_i32_0 = arith.constant 0 : i32
    %c0_i32_1 = arith.constant 0 : i32
    return %c0_i32, %c0_i32_0 : i32, i32
  }
  func.func @transform_8(%arg0: i32) -> (i32, i32) {
    %c0_i32 = arith.constant 0 : i32
    %c0_i32_0 = arith.constant 0 : i32
    %c0_i32_1 = arith.constant 0 : i32
    return %c0_i32, %c0_i32_0 : i32, i32
  }
  func.func @transform_9(%arg0: i32) -> (i32, i32) {
    %c0_i32 = arith.constant 0 : i32
    %c0_i32_0 = arith.constant 0 : i32
    %c0_i32_1 = arith.constant 0 : i32
    return %c0_i32, %c0_i32_0 : i32, i32
  }
  func.func @transform_10(%arg0: i32) -> (i32, i32) {
    %c0_i32 = arith.constant 0 : i32
    %c0_i32_0 = arith.constant 0 : i32
    return %arg0, %c0_i32 : i32, i32
  }
  func.func @transform_11(%arg0: i32) -> (i32, i32, i32) {
    %c0_i32 = arith.constant 0 : i32
    %c0_i32_0 = arith.constant 0 : i32
    %c0_i32_1 = arith.constant 0 : i32
    return %arg0, %c0_i32, %c0_i32_0 : i32, i32, i32
  }
}

</mosaic_0001>

<bundles_post_ra>
// kernel: tpu_custom_call.1
= control target key start
LH: loop header
LB: loop body
LE: loop exit
PB: predicated region body
PF: predicated region fallthrough
CT: control target
= control target key end

     0   :  { %s2661_s0 = inlined_call_operand.vmem [shape: f32[16,32], index: 0, kind: input, shape index: {}]   ;;  %s2662_s1 = inlined_call_operand.hbm [shape: f32[16,16,16], index: 1, kind: input, shape index: {}]   ;;  %s2663_s2 = inlined_call_operand.vmem [shape: f32[16,3], index: 2, kind: input, shape index: {}]   ;;  %s2664_s3 = inlined_call_operand.hbm [shape: f32[3,16], index: 3, kind: input, shape index: {}]   ;;  %s2665_s4 = inlined_call_operand.hbm [shape: f32[1,15], index: 4, kind: input, shape index: {}]   ;;  %s2666_s5 = inlined_call_operand.hbm [shape: f32[1,32], index: 5, kind: input, shape index: {}]   ;;  %s2667_s6 = inlined_call_operand.hbm [shape: f32[1,32], index: 6, kind: input, shape index: {}]   ;;  %s2668_s7 = inlined_call_operand.hbm [shape: f32[1,16], index: 7, kind: input, shape index: {}]   ;;  %s2669_s8 = inlined_call_operand.vmem [shape: f32[1,16], index: 8, kind: input, shape index: {}]   ;;  %s2670_s9 = inlined_call_operand.vmem [shape: f32[15,16], index: 9, kind: input, shape index: {}]   ;;  %s2671_s10 = inlined_call_operand.hbm [shape: f32[16,32], index: 10, kind: output, shape index: {0}]   ;;  %s2672_s11 = inlined_call_operand.hbm [shape: f32[16,16,16], index: 11, kind: output, shape index: {1}]  }
   0x1   :  { %2677 = sst [smem:[#allocation22_spill]] %s2664_s3 }
   0x2   :  { %2678 = sst [smem:[#allocation23_spill]] %s2665_s4 }
   0x3   :  { %2679 = sst [smem:[#allocation24_spill]] %s2666_s5 }
   0x4   :  { %2680 = sst [smem:[#allocation25_spill]] %s2667_s6 }
   0x5   :  { %2681 = sst [smem:[#allocation26_spill]] %s2668_s7 }
   0x6   :  { %17 = vsyncpa [#allocation3], 0 }
   0x7   :  { %19 = vsyncpa [#allocation3 + $0x1], 0 }
   0x8   :  { %20 = vsyncpa [#allocation6], 0 }
   0x9   :  { %21 = vsyncpa [#allocation9], 0 }
   0xa   :  { %22 = vsyncpa [#allocation12], 0 }
   0xb   :  { %23 = vsyncpa [#allocation4], 0 }
   0xc   :  { %25 = vsyncpa [#allocation4 + $0x1], 0 }
   0xd   :  { %26 = vsyncpa [#allocation15], 0 }
   0xe   :  { %28 = vsyncpa [#allocation15 + $0x1], 0  ;;  %s2055_s17 = smov 0   ;;  %s2057_s18 = smov 0  }
   0xf   :  { %s2059_s19 = smov 0   ;;  %s2061_s20 = smov 0  }
  0x10 LB: > { %s1979_s21 = smov [#allocation5]   ;;  %s2076_s23 = sadd.s32 4294967295, %s1977_s20   ;;  %s1977_s20 = sphi %s2061_s20, %s2709_s20   ;;  %s1973_s19 = sphi %s2059_s19, %s2708_s19   ;;  %s1969_s18 = sphi %s2057_s18, %s2707_s18   ;;  %s1965_s17 = sphi %s2055_s17, %s2706_s17  }
  0x11   : > { %s329_s22 = sshll.u32 %s1979_s21, 4  ;;  %p1443_p0 = scmp.ge.s32.totalorder %s1977_s20, 1  ;;  %s330_s22 = int_to_ptr.vmem [resolvable:$true] %s329_s22 }
  0x12   : > { %p2673_p1 = scmp.eq.s32.totalorder %s2076_s23, 0  ;;  %p316_p2 = scmp.lt.s32.totalorder %s1977_s20, 3 }
  0x13   : > { %s1980_s25 = smov [#allocation8]   ;;  %s1981_s27 = smov [#allocation7]  }
  0x14   : > { %p2081_p3 = pnand %p1443_p0, %p316_p2  ;;  %s351_s26 = sshll.u32 %s1980_s25, 4  ;;  %s352_s26 = int_to_ptr.vmem [resolvable:$true] %s351_s26 }
  0x15   : > { %s340_s28 = sshll.u32 %s1981_s27, 4  ;;  %s1982_s30 = smov [#allocation10]   ;;  %s2094_s28 = int_to_ptr.vmem [resolvable:$true] %s340_s28 }
  0x16   : > { %s2682_s24 = scalar_select %p2081_p3, 1, 0 }
  0x17   : > { %p1591_p5 = pneg %p2081_p3  ;;  %s2096_s12 = sshll.u32 %s1982_s30, 4  ;;  %s363_s12 = int_to_ptr.vmem [resolvable:$true] %s2096_s12 }
  0x18   : > { %s1724_s14 = scalar_lea.vmem %s330_s22, 64  ;;  %p1732_p11 = scmp.lt.s32.totalorder %s330_s22, %s330_s22 }
  0x19   : > { %p2090_p6 = pnand %p1591_p5, %p2673_p1  ;;  %p1725_p8 = scmp.ne.s32.totalorder %s330_s22, %s1724_s14 }
  0x1a   : > { %p1733_p12 = scmp.lt.s32.totalorder %s1724_s14, %s1724_s14 }
  0x1b   : > { %p2100_p7 = pneg %p2090_p6 }
  0x1c   : > { %p1734_p13 = por %p1733_p12, %p1732_p11 }
  0x1d   : > { %p1727_p9 = pnand %p1725_p8, %p2100_p7 }
  0x1f   : > { %p1728_p10 = pneg %p1727_p9 }
  0x21   : > { %p1735_p0 = pnand %p1734_p13, %p1728_p10 }
  0x23   : > { %1738 = shalt.err (!%p1735_p0)
}
  0x24   : > { %s2685_s3 = sld [smem:[#allocation22_spill]]  ;;  %s1750_s21 = scalar_lea.vmem %s352_s26, 16 }
  0x25   : > { %p1751_p2 = scmp.ne.s32.totalorder %s352_s26, %s1750_s21  ;;  %s1757_s25 = scalar_lea.vmem %s352_s26, 32 }
  0x26   : > { %p1758_p8 = scmp.lt.s32.totalorder %s352_s26, %s352_s26  ;;  %p1759_p9 = scmp.lt.s32.totalorder %s1757_s25, %s1750_s21 }
  0x27   : > { %p1753_p5 = pnand %p1751_p2, %p2100_p7 }
  0x28   : > { %p1760_p1 = por %p1759_p9, %p1758_p8 }
  0x29   : > { %p1754_p4 = pneg %p1753_p5 }
  0x2a   : > { %1594 = dma.hbm_to_vmem [thread:$0]  (!%p2090_p6), %s2685_s3, 64, %s330_s22, [#allocation6]  }
  0x2b   : > { %p1761_p3 = pnand %p1760_p1, %p1754_p4 }
  0x2d   : > { %1764 = shalt.err (!%p1761_p3)
}
  0x2e   : > { %s2686_s5 = sld [smem:[#allocation24_spill]]  ;;  %s1776_s22 = scalar_lea.vmem %s2094_s28, 16 }
  0x2f   : > { %p1777_p10 = scmp.ne.s32.totalorder %s2094_s28, %s1776_s22  ;;  %s1783_s14 = scalar_lea.vmem %s2094_s28, 32 }
  0x30   : > { %p1784_p1 = scmp.lt.s32.totalorder %s2094_s28, %s2094_s28  ;;  %p1785_p3 = scmp.lt.s32.totalorder %s1783_s14, %s1776_s22 }
  0x31   : > { %p1779_p11 = pnand %p1777_p10, %p2100_p7 }
  0x32   : > { %p1786_p4 = por %p1785_p3, %p1784_p1 }
  0x33   : > { %p1780_p12 = pneg %p1779_p11 }
  0x34   : > { %1600 = dma.hbm_to_vmem [thread:$0]  (!%p2090_p6), %s2686_s5, 16, %s352_s26, [#allocation9]  }
  0x35   : > { %p1787_p13 = pnand %p1786_p4, %p1780_p12 }
  0x37   : > { %1790 = shalt.err (!%p1787_p13)
}
  0x38   : > { %s2687_s4 = sld [smem:[#allocation23_spill]]  ;;  %s1983_s26 = smov [#allocation11]  }
  0x39   : > { %s373_s21 = sshll.u32 %s1983_s26, 4  ;;  %s1802_s25 = scalar_lea.vmem %s363_s12, 16  ;;  %s374_s21 = int_to_ptr.vmem [resolvable:$true] %s373_s21 }
  0x3a   : > { %p1803_p0 = scmp.ne.s32.totalorder %s363_s12, %s1802_s25  ;;  %s1809_s27 = scalar_lea.vmem %s363_s12, 32 }
  0x3b   : > { %p1810_p8 = scmp.lt.s32.totalorder %s363_s12, %s363_s12  ;;  %p1811_p9 = scmp.lt.s32.totalorder %s1809_s27, %s1802_s25 }
  0x3c   : > { %p1805_p2 = pnand %p1803_p0, %p2100_p7 }
  0x3d   : > { %p1812_p10 = por %p1811_p9, %p1810_p8 }
  0x3e   : > { %1597 = dma.hbm_to_vmem [thread:$0]  (!%p2090_p6), %s2687_s4, 16, %s2094_s28, [#allocation6]  }
  0x3f   : > { %p1806_p5 = pneg %p1805_p2 }
  0x41   : > { %p1813_p11 = pnand %p1812_p10, %p1806_p5 }
  0x43   : > { %1816 = shalt.err (!%p1813_p11)
}
  0x44   : > { %s2688_s6 = sld [smem:[#allocation25_spill]]  ;;  %s1828_s28 = scalar_lea.vmem %s374_s21, 16 }
  0x45   : > { %p1829_p12 = scmp.ne.s32.totalorder %s374_s21, %s1828_s28  ;;  %s1835_s14 = scalar_lea.vmem %s374_s21, 32 }
  0x46   : > { %p1836_p4 = scmp.lt.s32.totalorder %s374_s21, %s374_s21  ;;  %p1837_p13 = scmp.lt.s32.totalorder %s1835_s14, %s1828_s28 }
  0x47   : > { %p1831_p1 = pnand %p1829_p12, %p2100_p7 }
  0x48   : > { %p1838_p0 = por %p1837_p13, %p1836_p4 }
  0x49   : > { %p1832_p3 = pneg %p1831_p1 }
  0x4a   : > { %1603 = dma.hbm_to_vmem [thread:$0]  (!%p2090_p6), %s2688_s6, 16, %s363_s12, [#allocation9]  }
  0x4b   : > { %p1839_p2 = pnand %p1838_p0, %p1832_p3 }
  0x4d   : > { %1842 = shalt.err (!%p1839_p2)
}
  0x4e   : > { %s2689_s7 = sld [smem:[#allocation26_spill]]  ;;  %s1442_s12 = sadd.s32 4294967294, %s1977_s20  }
  0x4f   : > { %s2148_s29 = sadd.s32 1, %s1977_s20   ;;  %s67_s13 = sadd.s32 1, %s1973_s19 }
  0x50   : > { %s64_s26 = ssub.s32 %s1977_s20, %s2148_s29  ;;  %p74_p7 = scmp.ne.s32.totalorder %s1973_s19, %s1969_s18 }
  0x51   : > { %p65_p5 = scmp.eq.s32.totalorder %s64_s26, 0  ;;  %p75_p8 = scmp.eq.s32.totalorder %s1977_s20, 0 }
  0x52   : > { %p80_p9 = scmp.ne.s32.totalorder %s1969_s18, %s1965_s17  ;;  %p277_p10 = scmp.eq.s32.totalorder %s2076_s23, 1 }
  0x53   : > { %s2160_s25 = scalar_select %p65_p5, %s1973_s19, %s67_s13  }
  0x54   : > { %1606 = dma.hbm_to_vmem [thread:$0]  (!%p2090_p6), %s2689_s7, 16, %s374_s21, [#allocation12]  }
  0x55   : > { %p76_p11 = por %p75_p8, %p74_p7  ;;  %p2690_p12 = scmp.eq.s32.totalorder %s2076_s23, 0 }
  0x56   : > { %p2168_p6 = por %p277_p10, %p74_p7  ;;  %p283_p3 = scmp.eq.s32.totalorder %s1442_s12, 1 }
  0x57   : > { %p2164_p1 = por %p2690_p12, %p80_p9  ;;  %p1623_p4 = scmp.lt.s32.totalorder %s1977_s20, 2 }
  0x58   : > { %s2692_s21 = scalar_select %p2168_p6, 1, 0 }
  0x59   : > { %s2691_s27 = scalar_select %p2164_p1, 1, 0 }
  0x5a   : > { %s397_s30 = sand.u32 1, %s1973_s19   ;;  %p2174_p13 = por %p283_p3, %p80_p9 }
  0x5b   : > { %s1450_s28 = sshll.u32 %s397_s30, 7  ;;  %s1512_s14 = sshll.u32 %s1977_s20, 11 }
  0x5c   : > { %s2693_s22 = scalar_select %p2174_p13, 1, 0 }
  0x5d   : > { %s2182_s13 = scalar_lea.hbm %s2662_s1, %s1512_s14  ;;  %s401_s26 = scalar_lea.vmem [#allocation2], %s1450_s28 }
  0x5e   : > { %s409_s3 = sshll.u32 %s401_s26, 4  ;;  %p2184_p0 = pnand %p1623_p4, %p76_p11  ;;  %s2188_s3 = int_to_ptr.vmem [resolvable:$true] %s409_s3 }
  0x5f   : > { %s2190_s4 = scalar_lea.sflag [#allocation3], %s397_s30  ;;  %s1843_s5 = scalar_lea.hbm %s2182_s13, 2048 }
  0x60   : > { %p1844_p2 = scmp.ne.s32.totalorder %s2182_s13, %s1843_s5  ;;  %p1845_p7 = pneg %p2184_p0 }
  0x61   : > { %s1848_s28 = scalar_lea.hbm %s2662_s1, 4096  ;;  %p1849_p9 = scmp.lt.s32.totalorder %s2182_s13, %s2662_s1 }
  0x62   : > { %p1846_p5 = pnand %p1845_p7, %p1844_p2  ;;  %p1850_p10 = scmp.lt.s32.totalorder %s1848_s28, %s1843_s5 }
  0x64   : > { %p1847_p8 = pneg %p1846_p5  ;;  %p1851_p11 = por %p1850_p10, %p1849_p9 }
  0x66   : > { %p1852_p12 = pnand %p1851_p11, %p1847_p8 }
  0x68   : > { %1855 = shalt.err (!%p1852_p12)
}
  0x69   : > { %s1856_s30 = scalar_lea.vmem %s2188_s3, 2048  ;;  %s1984_s6 = smov [#allocation2]  }
  0x6a   : > { %p1857_p3 = scmp.ne.s32.totalorder %s2188_s3, %s1856_s30  ;;  %s1861_s7 = sshll.u32 %s1984_s6, 4  ;;  %s1862_s7 = int_to_ptr.vmem [resolvable:$false] %s1861_s7 }
  0x6b   : > { %s1863_s14 = scalar_lea.vmem %s1862_s7, 4096  ;;  %p1864_p5 = scmp.lt.s32.totalorder %s2188_s3, %s1862_s7 }
  0x6c   : > { %p1859_p4 = pnand %p1857_p3, %p1845_p7  ;;  %p1865_p13 = scmp.lt.s32.totalorder %s1863_s14, %s1856_s30 }
  0x6e   : > { %p1860_p2 = pneg %p1859_p4  ;;  %p1866_p6 = por %p1865_p13, %p1864_p5 }
  0x70   : > { %p1867_p1 = pnand %p1866_p6, %p1860_p2 }
  0x72   : > { %1870 = shalt.err (!%p1867_p1)
}
  0x73   : > { %s1985_s5 = smov 128   ;;  %s1986_s15 = smov 8  }
  0x74   : > { %1610 = dma.hbm_to_vmem [thread:$0]  (!%p2184_p0), %s2182_s13, 2048, %s2188_s3, %s2190_s4, %s1985_s5, %s1985_s5, %s1986_s15  }
  0x75   : > { %p2695_p7 = scmp.ne.s32.totalorder %s2682_s24, 0 }
  0x76   : > { %s2214_s6 = sand.u32 (!%p2695_p7), 1, %s1969_s18   ;;  %p2696_p1 = scmp.ne.s32.totalorder (!%p2695_p7), %s2691_s27, 0 }
  0x77   : > { %428 = sbr.rel (%p2695_p7) target bundleno = 720 (0x2d0), region = 60  ;;  %s1455_s7 = sshll.u32 (!%p2695_p7), %s2214_s6, 7 }
  0x78   : > { %s431_s28 = scalar_lea.sflag (!%p2695_p7), [#allocation3], %s2214_s6  ;;  %s2220_s16 = scalar_lea.vmem (!%p2695_p7), [#allocation2], %s1455_s7 }
  0x7c   : > { %1940 = dma.done.wait (%p2696_p1), %s431_s28, 2048  }
  0x7d   : > { %1942 = vsyncadd (%p2696_p1), %s431_s28, 4294965248  ;;  %p2697_p6 = scmp.eq.s32.totalorder %s2076_s23, 0 }
  0x7f   : > { %1944 = dma.done.wait (%p2697_p6), [#allocation6], 80   ;;  %p2698_p13 = pmov %p2697_p6 }
  0x80   : > { %p2699_p0 = pmov %p2697_p6 }
  0x81   : > { %1946 = vsyncadd (%p2698_p13), [#allocation6], 4294967216 }
  0x82   : > { %1948 = dma.done.wait (%p2699_p0), [#allocation9], 32   ;;  %p2700_p8 = pmov %p2699_p0 }
  0x83   : > { %p2701_p9 = pmov %p2699_p0 }
  0x84   : > { %1950 = vsyncadd (%p2700_p8), [#allocation9], 4294967264 }
  0x85   : > { %1952 = dma.done.wait (%p2701_p9), [#allocation12], 16   ;;  %p2702_p10 = pmov %p2699_p0 }
  0x86   : > { %p506_p11 = scmp.lt.s32.totalorder %s2076_s23, 1  ;;  %v1987_v0 = vmov 0   ;;  %v1988_v1 = vmov 2   ;;  %v1989_v3 = vmov 1   ;;  %v1001_v4 = vld [vmem:[%s2670_s9 + $0x8] sm:$0x7f]  ;;  %v828_v5 = vlaneseq }
  0x87   : > { %1954 = vsyncadd (%p2702_p10), [#allocation12], 4294967280  ;;  %1675 = vset.pattern.permute.xlu0 %v1987_v0  ;;  %1677 = vset.pattern.permute.xlu1 %v1988_v1  ;;  %vm1051_vm0 = vcmask 1046528   ;;  %v822_v9 = vld [vmem:[#allocation5] sm:$0x7]  ;;  %vm567_vm1 = vcmask 130048  }
  0x88   : > { %s2240_s3 = scalar_select %p506_p11, %s2076_s23, 1  ;;  %1533 = vmatprep.subr.msk.mxu0 %vm1051_vm0, %v1001_v4  ;;  %1561 = vmatprep.subr.msk.mxu1 %vm1051_vm0, %v1001_v4  ;;  %v829_v6 = vshrl.u32 %v828_v5, 7  ;;  %v1000_v18 = vld [vmem:[%s2670_s9] sm:$0xff]  ;;  %v2260_v41 = vld [vmem:[%s2220_s16 + $0x10] sm:$0xff]  ;;  %v2265_v43 = vld [vmem:[%s2220_s16 + $0x18] sm:$0xff]  ;;  %vm519_vm2 = vcmask 261120  }
  0x89   : > { %1534 = vmatpush3.msk.msra.mxu0 %vm1051_vm0, %v1001_v4  ;;  %1563 = vmatpush3.msk.msra.mxu1 %vm1051_vm0, %v1001_v4  ;;  %v2255_v39 = vld [vmem:[%s2220_s16] sm:$0xff]  ;;  %v574_v42 = vsel %vm567_vm1, %v2260_v41, 0.0  ;;  %v577_v44 = vsel %vm567_vm1, %v2265_v43, 0.0  ;;  %v2270_v45 = vld [vmem:[%s2220_s16 + $0x28] sm:$0xff]  ;;  %v2280_v49 = vld [vmem:[%s2220_s16 + $0x38] sm:$0xff]  ;;  %vm1002_vm3 = vcmask 121856  }
  0x8a   : > { %s1463_s4 = sshll.u32 %s2240_s3, 3  ;;  %v830_v7 = vsub.s32 0, %v829_v6  ;;  %v852_v8 = vsub.s32 2, %v829_v6  ;;  %v841_v10 = vsub.s32 1, %v829_v6  ;;  %1535 = vmatprep.subr.mxu0 %v1000_v18  ;;  %1562 = vmatprep.subr.mxu1 %v1000_v18  ;;  %v903_v27 = vsub.s32 4, %v829_v6  ;;  %v2273_v46 = vld [vmem:[%s2220_s16 + $0x8] sm:$0xff] }
  0x8b   : > { %s514_s13 = scalar_lea.vmem %s2663_s2, %s1463_s4  ;;  %1536 = vmatpush3.msra.mxu0 %v1000_v18  ;;  %1564 = vmatpush3.msra.mxu1 %v1000_v18  ;;  %v914_v30 = vsub.s32 5, %v829_v6  ;;  %v892_v33 = vsub.s32 3, %v829_v6  ;;  %v925_v34 = vsub.s32 6, %v829_v6  ;;  %v936_v37 = vsub.s32 7, %v829_v6  ;;  %v2283_v50 = vld [vmem:[%s2220_s16 + $0x20] sm:$0xff]  ;;  %v2290_v53 = vld [vmem:[%s2220_s16 + $0x48] sm:$0xff]  ;;  %s509_s28 = scalar_lea.vmem %s2661_s0, %s1463_s4 }
  0x8c   : > { %v821_v2 = vld [vmem:[%s514_s13] sm:$0xff]  ;;  %v831_v11 = vrot.slane %v822_v9, %v830_v7  ;;  %v853_v13 = vrot.slane %v822_v9, %v852_v8  ;;  %v842_v15 = vrot.slane %v822_v9, %v841_v10  ;;  %v568_v40 = vsel %vm567_vm1, %v2255_v39, 0.0  ;;  %v2293_v54 = vld [vmem:[%s2220_s16 + $0x30] sm:$0xff]  ;;  %v2300_v57 = vld [vmem:[%s2220_s16 + $0x58] sm:$0xff]  ;;  %s2497_s4 = scalar_lea.vmem [#allocation14], %s1455_s7  ;;  %s1461_s7 = sshll.u32 %s2214_s6, 3 }
  0x8d   : > { %825 = vperm.xlu0 %1675, %v821_v2   ;;  %847 = vperm.xlu1 %1677, %v821_v2   ;;  %v583_v47 = vsel %vm567_vm1, %v2270_v45, 0.0  ;;  %v571_v48 = vsel %vm567_vm1, %v2273_v46, 0.0  ;;  %v589_v51 = vsel %vm567_vm1, %v2280_v49, 0.0  ;;  %v580_v52 = vsel %vm567_vm1, %v2283_v50, 0.0  ;;  %v2303_v58 = vld [vmem:[%s2220_s16 + $0x40] sm:$0xff]  ;;  %v2310_v61 = vld [vmem:[%s2220_s16 + $0x68] sm:$0xff] }
  0x8e   : > { %v595_v55 = vsel %vm567_vm1, %v2290_v53, 0.0  ;;  %v586_v56 = vsel %vm567_vm1, %v2293_v54, 0.0  ;;  %v601_v59 = vsel %vm567_vm1, %v2300_v57, 0.0  ;;  %v592_v60 = vsel %vm567_vm1, %v2303_v58, 0.0  ;;  %v2313_v62 = vld [vmem:[%s2220_s16 + $0x50] sm:$0xff]  ;;  %s1505_s24 = sshll.u32 %s2076_s23, 7 }
  0x8f   : > { %v607_v63 = vsel %vm567_vm1, %v2310_v61, 0.0  ;;  %v598_v0 = vsel %vm567_vm1, %v2313_v62, 0.0  ;;  %v2330_v5 = vld [vmem:[%s2220_s16 + $0x70] sm:$0xff]  ;;  %v2343_v9 = vld [vmem:[#allocation7] ss:$0 sm:$0xff]  ;;  %s498_s27 = scalar_lea.vmem [#allocation13], %s1461_s7  ;;  %s2580_s5 = scalar_lea.hbm %s2671_s10, %s1505_s24 }
  0x90   : > { %v610_v6 = vsel %vm567_vm1, %v2330_v5, 0.0  ;;  %s1251_s13 = sshll.u32 %s498_s27, 4  ;;  %s1514_s12 = sshll.u32 %s2076_s23, 11  ;;  %s2584_s13 = int_to_ptr.vmem [resolvable:$true] %s1251_s13 }
  0x91   : > { %1676 = vset.pattern.permute.xlu0 %v1989_v3  ;;  %s1265_s26 = sshll.u32 %s2497_s4, 4  ;;  %s1871_s3 = scalar_lea.vmem %s2584_s13, 128  ;;  %s2594_s26 = int_to_ptr.vmem [resolvable:$true] %s1265_s26 }
  0x92   : > { %836 = vperm.xlu0 %1676, %v821_v2   ;;  %v2323_v2 = vld [vmem:[%s2220_s16 + $0x60] sm:$0xff]  ;;  %p1872_p12 = scmp.ne.s32.totalorder %s2584_s13, %s1871_s3  ;;  %p2703_p3 = scmp.ne.s32.totalorder %s2692_s21, 0 }
  0x93   : > { %v604_v4 = vsel %vm567_vm1, %v2323_v2, 0.0  ;;  %s1991_s7 = smov [#allocation13]  }
  0x94   : > { %p1873_p4 = pnand %p1872_p12, %p2703_p3  ;;  %s1875_s24 = sshll.u32 %s1991_s7, 4  ;;  %s1876_s24 = int_to_ptr.vmem [resolvable:$false] %s1875_s24 }
  0x95   : > { %s1877_s30 = scalar_lea.vmem %s1876_s24, 256  ;;  %p1878_p5 = scmp.lt.s32.totalorder %s2584_s13, %s1876_s24 }
  0x96   : > { %1678 = vset.pattern.permute.xlu0 %v1988_v1  ;;  %v2320_v1 = vld [vmem:[%s2220_s16 + $0x78] sm:$0xff]  ;;  %s1233_s16 = scalar_lea.sflag [#allocation4], %s2214_s6  ;;  %p1874_p2 = pneg %p1873_p4 }
  0x97   : > { %v613_v3 = vsel %vm567_vm1, %v2320_v1, 0.0  ;;  %p1879_p7 = scmp.lt.s32.totalorder %s1877_s30, %s1871_s3 }
  0x99   : > { %p1880_p1 = por %p1879_p7, %p1878_p5 }
  0x9b   : > { %p1881_p6 = pnand %p1880_p1, %p1874_p2 }
 0x108   : > { %v826_v12 = vpop.permute.xlu0 %825  ;;  %v848_v14 = vpop.permute.xlu1 %847 }
 0x109   : > { %v832_v16 = vsub.f32 %v826_v12, %v831_v11  ;;  %v854_v17 = vsub.f32 %v848_v14, %v853_v13  ;;  %v1990_v12 = vmov 0.0  }
 0x10b   : > { %v833_v21 = vmul.f32 %v832_v16, %v832_v16  ;;  %v855_v23 = vmul.f32 %v854_v17, %v854_v17 }
 0x10d   : > { %v837_v19 = vpop.permute.xlu0 %836 }
 0x10e   : > { %v843_v20 = vsub.f32 %v837_v19, %v842_v15 }
 0x110   : > { %v844_v22 = vmul.f32 %v843_v20, %v843_v20 }
 0x112   : > { %v845_v24 = vadd.f32 %v844_v22, %v833_v21 }
 0x114   : > { %v856_v25 = vadd.f32 %v855_v23, %v845_v24 }
 0x116   : > { %v860_v26 = vrot.slane %v856_v25, %v830_v7  ;;  %v871_v28 = vrot.slane %v856_v25, %v841_v10  ;;  %v904_v29 = vrot.slane %v856_v25, %v903_v27  ;;  %v882_v31 = vrot.slane %v856_v25, %v852_v8  ;;  %v2339_v7 = vld [vmem:[%s509_s28] sm:$0xff]  ;;  %s2592_s28 = scalar_lea.hbm %s2672_s11, %s1514_s12 }
 0x117   : > { %v915_v32 = vrot.slane %v856_v25, %v914_v30  ;;  %v893_v35 = vrot.slane %v856_v25, %v892_v33  ;;  %v926_v36 = vrot.slane %v856_v25, %v925_v34  ;;  %v937_v38 = vrot.slane %v856_v25, %v936_v37 }
 0x118   : > { %866 = vbcast.lane.b32.xlu0 %v860_v26, 264  ;;  %862 = vbcast.lane.b32.xlu1 %v860_v26, 256  ;;  %v520_v8 = vsel %vm519_vm2, %v2339_v7, 0.0 }
 0x11c   : > { %873 = vbcast.lane.b32.xlu0 %v871_v28, 256  ;;  %906 = vbcast.lane.b32.xlu1 %v904_v29, 256 }
 0x120   : > { %877 = vbcast.lane.b32.xlu0 %v871_v28, 264  ;;  %910 = vbcast.lane.b32.xlu1 %v904_v29, 264 }
 0x124   : > { %884 = vbcast.lane.b32.xlu0 %v882_v31, 256  ;;  %917 = vbcast.lane.b32.xlu1 %v915_v32, 256 }
 0x128   : > { %888 = vbcast.lane.b32.xlu0 %v882_v31, 264  ;;  %921 = vbcast.lane.b32.xlu1 %v915_v32, 264 }
 0x12c   : > { %895 = vbcast.lane.b32.xlu0 %v893_v35, 256  ;;  %928 = vbcast.lane.b32.xlu1 %v926_v36, 256 }
 0x130   : > { %899 = vbcast.lane.b32.xlu0 %v893_v35, 264  ;;  %932 = vbcast.lane.b32.xlu1 %v926_v36, 264 }
 0x134   : > { %939 = vbcast.lane.b32.xlu1 %v937_v38, 256 }
 0x138   : > { %943 = vbcast.lane.b32.xlu1 %v937_v38, 264 }
 0x14f   : > { %569 = vadd.xlane.f32.xlu0 %v568_v40 }
 0x153   : > { %575 = vadd.xlane.f32.xlu0 %v574_v42 }
 0x157   : > { %578 = vadd.xlane.f32.xlu0 %v577_v44 }
 0x15b   : > { %584 = vadd.xlane.f32.xlu0 %v583_v47 }
 0x15c   : > { %572 = vadd.xlane.f32.xlu1 %v571_v48 }
 0x15f   : > { %590 = vadd.xlane.f32.xlu0 %v589_v51 }
 0x160   : > { %581 = vadd.xlane.f32.xlu1 %v580_v52 }
 0x163   : > { %596 = vadd.xlane.f32.xlu0 %v595_v55 }
 0x164   : > { %587 = vadd.xlane.f32.xlu1 %v586_v56 }
 0x167   : > { %602 = vadd.xlane.f32.xlu0 %v601_v59 }
 0x168   : > { %593 = vadd.xlane.f32.xlu1 %v592_v60 }
 0x16b   : > { %608 = vadd.xlane.f32.xlu0 %v607_v63 }
 0x16c   : > { %599 = vadd.xlane.f32.xlu1 %v598_v0 }
 0x16f   : > { %614 = vadd.xlane.f32.xlu0 %v613_v3 }
 0x170   : > { %605 = vadd.xlane.f32.xlu1 %v604_v4 }
 0x174   : > { %611 = vadd.xlane.f32.xlu1 %v610_v6 }
 0x178   : > { %521 = vadd.xlane.f32.xlu1 %v520_v8 }
 0x18a   : > { %v867_v10 = vpop.permute.xlu0 %866  ;;  %v863_v11 = vpop.permute.xlu1 %862 }
 0x18b   : > { %vm953_vm4 = vcmp.gt.f32.partialorder %v867_v10, %v2343_v9  ;;  %vm952_vm5 = vcmp.gt.f32.partialorder %v863_v11, %v2343_v9 }
 0x18c   : > { %v1471_v13 = vsel %vm953_vm4, 1.0, %v1990_v12  ;;  %v1470_v14 = vsel %vm952_vm5, 1.0, %v1990_v12 }
 0x18d   : > { %1537 = vmatprep.mubr.msk.f32.mxu0 %vm1002_vm3, %v1470_v14 }
 0x18e   : > { %v874_v15 = vpop.permute.xlu0 %873  ;;  %1538 = vmatmul.mubr.msk.f32.vlgmr.msra.gmra.mxu0 %vm1002_vm3, %v1471_v13  ;;  %v907_v16 = vpop.permute.xlu1 %906 }
 0x18f   : > { %vm954_vm6 = vcmp.gt.f32.partialorder %v874_v15, %v2343_v9  ;;  %vm960_vm7 = vcmp.gt.f32.partialorder %v907_v16, %v2343_v9 }
 0x190   : > { %v1472_v17 = vsel %vm954_vm6, 1.0, %v1990_v12  ;;  %v1478_v18 = vsel %vm960_vm7, 1.0, %v1990_v12 }
 0x191   : > { %1540 = vmatprep.mubr.msk.f32.mxu0 %vm1002_vm3, %v1472_v17  ;;  %1549 = vmatprep.mubr.msk.f32.mxu1 %vm1002_vm3, %v1478_v18 }
 0x192   : > { %v878_v19 = vpop.permute.xlu0 %877  ;;  %v911_v20 = vpop.permute.xlu1 %910 }
 0x193   : > { %vm955_vm8 = vcmp.gt.f32.partialorder %v878_v19, %v2343_v9  ;;  %vm961_vm9 = vcmp.gt.f32.partialorder %v911_v20, %v2343_v9 }
 0x194   : > { %v1473_v21 = vsel %vm955_vm8, 1.0, %v1990_v12  ;;  %v1479_v22 = vsel %vm961_vm9, 1.0, %v1990_v12 }
 0x195   : > { %1541 = vmatmul.mubr.msk.f32.gmra.mxu0 %vm1002_vm3, %v1473_v21  ;;  %1550 = vmatmul.mubr.msk.f32.vlgmr.msra.gmra.mxu1 %vm1002_vm3, %v1479_v22 }
 0x196   : > { %v885_v23 = vpop.permute.xlu0 %884  ;;  %v918_v24 = vpop.permute.xlu1 %917 }
 0x197   : > { %vm956_vm10 = vcmp.gt.f32.partialorder %v885_v23, %v2343_v9  ;;  %vm962_vm11 = vcmp.gt.f32.partialorder %v918_v24, %v2343_v9 }
 0x198   : > { %v1474_v25 = vsel %vm956_vm10, 1.0, %v1990_v12  ;;  %v1480_v26 = vsel %vm962_vm11, 1.0, %v1990_v12 }
 0x199   : > { %1543 = vmatprep.mubr.msk.f32.mxu0 %vm1002_vm3, %v1474_v25  ;;  %1552 = vmatprep.mubr.msk.f32.mxu1 %vm1002_vm3, %v1480_v26 }
 0x19a   : > { %v889_v27 = vpop.permute.xlu0 %888  ;;  %v922_v28 = vpop.permute.xlu1 %921 }
 0x19b   : > { %vm957_vm12 = vcmp.gt.f32.partialorder %v889_v27, %v2343_v9  ;;  %vm963_vm13 = vcmp.gt.f32.partialorder %v922_v28, %v2343_v9 }
 0x19c   : > { %v1475_v29 = vsel %vm957_vm12, 1.0, %v1990_v12  ;;  %v1481_v30 = vsel %vm963_vm13, 1.0, %v1990_v12 }
 0x19d   : > { %1544 = vmatmul.mubr.msk.f32.gmra.mxu0 %vm1002_vm3, %v1475_v29  ;;  %1553 = vmatmul.mubr.msk.f32.gmra.mxu1 %vm1002_vm3, %v1481_v30 }
 0x19e   : > { %v896_v31 = vpop.permute.xlu0 %895  ;;  %v929_v32 = vpop.permute.xlu1 %928 }
 0x19f   : > { %vm958_vm14 = vcmp.gt.f32.partialorder %v896_v31, %v2343_v9  ;;  %vm964_vm15 = vcmp.gt.f32.partialorder %v929_v32, %v2343_v9 }
 0x1a0   : > { %v1476_v33 = vsel %vm958_vm14, 1.0, %v1990_v12  ;;  %v1482_v34 = vsel %vm964_vm15, 1.0, %v1990_v12 }
 0x1a1   : > { %1546 = vmatprep.mubr.msk.f32.mxu0 %vm1002_vm3, %v1476_v33  ;;  %1555 = vmatprep.mubr.msk.f32.mxu1 %vm1002_vm3, %v1482_v34 }
 0x1a2   : > { %v900_v35 = vpop.permute.xlu0 %899  ;;  %v933_v36 = vpop.permute.xlu1 %932 }
 0x1a3   : > { %vm959_vm0 = vcmp.gt.f32.partialorder %v900_v35, %v2343_v9  ;;  %vm965_vm4 = vcmp.gt.f32.partialorder %v933_v36, %v2343_v9 }
 0x1a4   : > { %v1477_v37 = vsel %vm959_vm0, 1.0, %v1990_v12  ;;  %v1483_v38 = vsel %vm965_vm4, 1.0, %v1990_v12 }
 0x1a5   : > { %1547 = vmatmul.mubr.msk.f32.gmra.mxu0 %vm1002_vm3, %v1477_v37  ;;  %1556 = vmatmul.mubr.msk.f32.gmra.mxu1 %vm1002_vm3, %v1483_v38 }
 0x1a6   : > { %v940_v40 = vpop.permute.xlu1 %939 }
 0x1a7   : > { %vm966_vm5 = vcmp.gt.f32.partialorder %v940_v40, %v2343_v9 }
 0x1a8   : > { %v1484_v42 = vsel %vm966_vm5, 1.0, %v1990_v12 }
 0x1a9   : > { %1558 = vmatprep.mubr.msk.f32.mxu1 %vm1002_vm3, %v1484_v42 }
 0x1aa   : > { %v944_v44 = vpop.permute.xlu1 %943 }
 0x1ab   : > { %vm967_vm6 = vcmp.gt.f32.partialorder %v944_v44, %v2343_v9 }
 0x1ac   : > { %v1485_v47 = vsel %vm967_vm6, 1.0, %v1990_v12 }
 0x1ad   : > { %1559 = vmatmul.mubr.msk.f32.gmra.mxu1 %vm1002_vm3, %v1485_v47 }
 0x1d8   : > { %v570_v48 = vpop.xlane.xlu0 %569 }
 0x1d9   : > { %v617_v51 = vmul.f32 0.0625, %v570_v48 }
 0x1db   : > { %v2378_v52 = vsub.f32 %v2255_v39, %v617_v51 }
 0x1dc   : > { %v576_v55 = vpop.xlane.xlu0 %575 }
 0x1dd   : > { %v619_v56 = vmul.f32 0.0625, %v576_v55  ;;  %v649_v59 = vmul.f32 %v2378_v52, %v2378_v52 }
 0x1df   : > { %v2383_v60 = vsub.f32 %v2260_v41, %v619_v56  ;;  %v665_v63 = vsel %vm567_vm1, %v649_v59, 0.0 }
 0x1e0   : > { %666 = vadd.xlane.f32.xlu0 %v665_v63  ;;  %v579_v0 = vpop.xlane.xlu0 %578 }
 0x1e1   : > { %v651_v3 = vmul.f32 %v2383_v60, %v2383_v60  ;;  %v620_v4 = vmul.f32 0.0625, %v579_v0 }
 0x1e3   : > { %v671_v6 = vsel %vm567_vm1, %v651_v3, 0.0  ;;  %v2390_v9 = vsub.f32 %v2265_v43, %v620_v4 }
 0x1e4   : > { %672 = vadd.xlane.f32.xlu0 %v671_v6  ;;  %v585_v39 = vpop.xlane.xlu0 %584 }
 0x1e5   : > { %v573_v8 = vpop.xlane.xlu1 %572  ;;  %v622_v11 = vmul.f32 0.0625, %v585_v39  ;;  %v652_v14 = vmul.f32 %v2390_v9, %v2390_v9 }
 0x1e6   : > { %v618_v10 = vmul.f32 0.0625, %v573_v8 }
 0x1e7   : > { %v2398_v16 = vsub.f32 %v2270_v45, %v622_v11  ;;  %v674_v21 = vsel %vm567_vm1, %v652_v14, 0.0 }
 0x1e8   : > { %v2393_v41 = vsub.f32 %v2273_v46, %v618_v10  ;;  %v591_v12 = vpop.xlane.xlu0 %590 }
 0x1e9   : > { %v582_v13 = vpop.xlane.xlu1 %581  ;;  %v624_v18 = vmul.f32 0.0625, %v591_v12  ;;  %v654_v25 = vmul.f32 %v2398_v16, %v2398_v16 }
 0x1ea   : > { %v621_v15 = vmul.f32 0.0625, %v582_v13  ;;  %v650_v17 = vmul.f32 %v2393_v41, %v2393_v41 }
 0x1eb   : > { %v2410_v24 = vsub.f32 %v2280_v49, %v624_v18  ;;  %v680_v32 = vsel %vm567_vm1, %v654_v25, 0.0 }
 0x1ec   : > { %v2403_v43 = vsub.f32 %v2283_v50, %v621_v15  ;;  %v668_v19 = vsel %vm567_vm1, %v650_v17, 0.0  ;;  %v597_v46 = vpop.xlane.xlu0 %596 }
 0x1ed   : > { %v588_v20 = vpop.xlane.xlu1 %587  ;;  %669 = vadd.xlane.f32.xlu1 %v668_v19  ;;  %v626_v22 = vmul.f32 0.0625, %v597_v46 }
 0x1ee   : > { %v623_v23 = vmul.f32 0.0625, %v588_v20  ;;  %v653_v45 = vmul.f32 %v2403_v43, %v2403_v43 }
 0x1ef   : > { %v2419_v29 = vsub.f32 %v2290_v53, %v626_v22 }
 0x1f0   : > { %v2415_v50 = vsub.f32 %v2293_v54, %v623_v23  ;;  %v677_v26 = vsel %vm567_vm1, %v653_v45, 0.0  ;;  %v603_v27 = vpop.xlane.xlu0 %602  ;;  %v656_v54 = vmul.f32 %v2410_v24, %v2410_v24 }
 0x1f1   : > { %v594_v28 = vpop.xlane.xlu1 %593  ;;  %678 = vadd.xlane.f32.xlu0 %v677_v26  ;;  %675 = vadd.xlane.f32.xlu1 %v674_v21  ;;  %v628_v30 = vmul.f32 0.0625, %v603_v27  ;;  %v658_v37 = vmul.f32 %v2419_v29, %v2419_v29 }
 0x1f2   : > { %v625_v31 = vmul.f32 0.0625, %v594_v28  ;;  %v655_v49 = vmul.f32 %v2415_v50, %v2415_v50  ;;  %v686_v42 = vsel %vm567_vm1, %v656_v54, 0.0 }
 0x1f3   : > { %v2431_v53 = vsub.f32 %v2300_v57, %v628_v30  ;;  %v692_v57 = vsel %vm567_vm1, %v658_v37, 0.0 }
 0x1f4   : > { %v2427_v33 = vsub.f32 %v2303_v58, %v625_v31  ;;  %v683_v34 = vsel %vm567_vm1, %v655_v49, 0.0  ;;  %v609_v35 = vpop.xlane.xlu0 %608 }
 0x1f5   : > { %v600_v36 = vpop.xlane.xlu1 %599  ;;  %684 = vadd.xlane.f32.xlu0 %v683_v34  ;;  %681 = vadd.xlane.f32.xlu1 %v680_v32  ;;  %v630_v58 = vmul.f32 0.0625, %v609_v35  ;;  %v660_v55 = vmul.f32 %v2431_v53, %v2431_v53  ;;  %v2481_v32 = vld [vmem:[#allocation11] ss:$0 sm:$0xff] }
 0x1f6   : > { %v627_v38 = vmul.f32 0.0625, %v600_v36  ;;  %v657_v40 = vmul.f32 %v2427_v33, %v2427_v33  ;;  %v2487_v36 = vld [vmem:[%s2669_s8] ss:$0 sm:$0xff] }
 0x1f7   : > { %v2448_v63 = vsub.f32 %v2310_v61, %v630_v58  ;;  %v698_v6 = vsel %vm567_vm1, %v660_v55, 0.0 }
 0x1f8   : > { %v2439_v44 = vsub.f32 %v2313_v62, %v627_v38  ;;  %v689_v47 = vsel %vm567_vm1, %v657_v40, 0.0  ;;  %v615_v48 = vpop.xlane.xlu0 %614 }
 0x1f9   : > { %v606_v51 = vpop.xlane.xlu1 %605  ;;  %690 = vadd.xlane.f32.xlu0 %v689_v47  ;;  %687 = vadd.xlane.f32.xlu1 %v686_v42  ;;  %v632_v62 = vmul.f32 0.0625, %v615_v48  ;;  %v662_v61 = vmul.f32 %v2448_v63, %v2448_v63 }
 0x1fa   : > { %v629_v56 = vmul.f32 0.0625, %v606_v51  ;;  %v659_v59 = vmul.f32 %v2439_v44, %v2439_v44 }
 0x1fb   : > { %v2458_v10 = vsub.f32 %v2320_v1, %v632_v62  ;;  %v704_v15 = vsel %vm567_vm1, %v662_v61, 0.0 }
 0x1fc   : > { %v2451_v0 = vsub.f32 %v2323_v2, %v629_v56  ;;  %v695_v3 = vsel %vm567_vm1, %v659_v59, 0.0 }
 0x1fd   : > { %v612_v4 = vpop.xlane.xlu1 %611  ;;  %696 = vadd.xlane.f32.xlu0 %v695_v3  ;;  %693 = vadd.xlane.f32.xlu1 %v692_v57  ;;  %v664_v1 = vmul.f32 %v2458_v10, %v2458_v10 }
 0x1fe   : > { %v631_v39 = vmul.f32 0.0625, %v612_v4  ;;  %v661_v8 = vmul.f32 %v2451_v0, %v2451_v0 }
 0x1ff   : > { %v710_v18 = vsel %vm567_vm1, %v664_v1, 0.0 }
 0x200   : > { %v2463_v2 = vsub.f32 %v2330_v5, %v631_v39  ;;  %v701_v11 = vsel %vm567_vm1, %v661_v8, 0.0 }
 0x201   : > { %702 = vadd.xlane.f32.xlu0 %v701_v11  ;;  %699 = vadd.xlane.f32.xlu1 %v698_v6  ;;  %v522_v12 = vpop.xlane.xlu1 %521 }
 0x202   : > { %v524_v13 = vmul.f32 0.03125, %v522_v12  ;;  %v663_v14 = vmul.f32 %v2463_v2, %v2463_v2 }
 0x204   : > { %v2472_v17 = vsub.f32 %v2339_v7, %v524_v13  ;;  %v707_v5 = vsel %vm567_vm1, %v663_v14, 0.0 }
 0x205   : > { %708 = vadd.xlane.f32.xlu0 %v707_v5  ;;  %705 = vadd.xlane.f32.xlu1 %v704_v15 }
 0x206   : > { %v526_v19 = vmul.f32 %v2472_v17, %v2472_v17 }
 0x208   : > { %v527_v46 = vsel %vm519_vm2, %v526_v19, 0.0 }
 0x209   : > { %711 = vadd.xlane.f32.xlu1 %v710_v18  ;;  %528 = vadd.xlane.f32.xlu0 %v527_v46 }
 0x24e   : > { %v2479_v49 = vpop.f32.mrf.mxu0 }
 0x250   : > { %v1121_v48 = vpop.f32.mrf.mxu0 }
 0x255   : > { %v2492_v56 = vpop.f32.mrf.mxu0 }
 0x257   : > { %v1131_v11 = vpop.f32.mrf.mxu0 }
 0x269   : > { %v667_v20 = vpop.xlane.xlu0 %666 }
 0x26a   : > { %v713_v21 = vmul.f32 0.0625, %v667_v20 }
 0x26c   : > { %v729_v22 = vadd.f32 1e-05, %v713_v21 }
 0x26d   : > { %v673_v23 = vpop.xlane.xlu0 %672 }
 0x26e   : > { %1679 = vrsqrt.f32 %v729_v22  ;;  %v715_v7 = vmul.f32 0.0625, %v673_v23 }
 0x270   : > { %v731_v45 = vadd.f32 1e-05, %v715_v7  ;;  %v1545_v7 = vpop.f32.mrf.mxu0 }
 0x272   : > { %1681 = vrsqrt.f32 %v731_v45 }
 0x276   : > { %v670_v25 = vpop.xlane.xlu1 %669 }
 0x277   : > { %v714_v26 = vmul.f32 0.0625, %v670_v25 }
 0x279   : > { %v730_v27 = vadd.f32 1e-05, %v714_v26 }
 0x27a   : > { %v679_v28 = vpop.xlane.xlu0 %678  ;;  %v676_v30 = vpop.xlane.xlu1 %675 }
 0x27b   : > { %v1680_v31 = vpop.eup %1679  ;;  %1683 = vrsqrt.f32 %v730_v27  ;;  %v717_v54 = vmul.f32 0.0625, %v679_v28  ;;  %v716_v34 = vmul.f32 0.0625, %v676_v30 }
 0x27c   : > { %v761_v35 = vmul.f32 %v1680_v31, %v2378_v52 }
 0x27d   : > { %v733_v37 = vadd.f32 1e-05, %v717_v54  ;;  %v732_v38 = vadd.f32 1e-05, %v716_v34 }
 0x27e   : > { %v783_v40 = vmul.f32 %v2481_v32, %v761_v35  ;;  %v685_v42 = vpop.xlane.xlu0 %684  ;;  %v682_v58 = vpop.xlane.xlu1 %681 }
 0x27f   : > { %v1682_v47 = vpop.eup %1681  ;;  %1685 = vrsqrt.f32 %v733_v37  ;;  %v719_v51 = vmul.f32 0.0625, %v685_v42  ;;  %v718_v57 = vmul.f32 0.0625, %v682_v58 }
 0x280   : > { %v805_v55 = vadd.f32 %v2487_v36, %v783_v40  ;;  %v763_v52 = vmul.f32 %v1682_v47, %v2383_v60  ;;  %1687 = vrsqrt.f32 %v732_v38  ;;  %v1141_v38 = vpop.f32.mrf.mxu0 }
 0x281   : > { %v735_v59 = vadd.f32 1e-05, %v719_v51  ;;  %v734_v62 = vadd.f32 1e-05, %v718_v57 }
 0x282   : > { %v1200_v3 = vadd.f32 %v1121_v48, %v805_v55  ;;  %v785_v4 = vmul.f32 %v2481_v32, %v763_v52  ;;  %v691_v6 = vpop.xlane.xlu0 %690  ;;  %v688_v39 = vpop.xlane.xlu1 %687 }
 0x283   : > { %1689 = vrsqrt.f32 %v735_v59  ;;  %v721_v8 = vmul.f32 0.0625, %v691_v6  ;;  %v720_v61 = vmul.f32 0.0625, %v688_v39  ;;  %v2511_v48 = vpop.f32.mrf.mxu1  ;;  %v1548_v55 = vpop.f32.mrf.mxu0 }
 0x284   : > { %1216 = vst.msk [vmem:[%s2497_s4] sm:$0xff] %vm567_vm1, %v1200_v3  ;;  %v807_v60 = vadd.f32 %v2487_v36, %v785_v4  ;;  %1691 = vrsqrt.f32 %v734_v62 }
 0x285   : > { %v737_v12 = vadd.f32 1e-05, %v721_v8  ;;  %v736_v13 = vadd.f32 1e-05, %v720_v61 }
 0x286   : > { %v1202_v14 = vadd.f32 %v1131_v11, %v807_v60  ;;  %v697_v15 = vpop.xlane.xlu0 %696  ;;  %v694_v1 = vpop.xlane.xlu1 %693 }
 0x287   : > { %1693 = vrsqrt.f32 %v737_v12  ;;  %v723_v5 = vmul.f32 0.0625, %v697_v15  ;;  %v722_v18 = vmul.f32 0.0625, %v694_v1  ;;  %v1161_v11 = vpop.f32.mrf.mxu1 }
 0x288   : > { %v1684_v19 = vpop.eup %1683  ;;  %1218 = vst.msk [vmem:[%s2497_s4 + $0x10] sm:$0xff] %vm567_vm1, %v1202_v14  ;;  %1695 = vrsqrt.f32 %v736_v13 }
 0x289   : > { %v762_v46 = vmul.f32 %v1684_v19, %v2393_v41  ;;  %v739_v20 = vadd.f32 1e-05, %v723_v5  ;;  %v738_v21 = vadd.f32 1e-05, %v722_v18  ;;  %v1554_v5 = vpop.f32.mrf.mxu1  ;;  %v1151_v18 = vpop.f32.mrf.mxu0 }
 0x28a   : > { %v703_v22 = vpop.xlane.xlu0 %702  ;;  %v700_v23 = vpop.xlane.xlu1 %699 }
 0x28b   : > { %v784_v45 = vmul.f32 %v2481_v32, %v762_v46  ;;  %1697 = vrsqrt.f32 %v739_v20  ;;  %v725_v25 = vmul.f32 0.0625, %v703_v22  ;;  %v724_v26 = vmul.f32 0.0625, %v700_v23 }
 0x28c   : > { %v1686_v27 = vpop.eup %1685  ;;  %1699 = vrsqrt.f32 %v738_v21 }
 0x28d   : > { %v1688_v28 = vpop.eup %1687  ;;  %v806_v30 = vadd.f32 %v2487_v36, %v784_v45  ;;  %v765_v31 = vmul.f32 %v1686_v27, %v2403_v43  ;;  %v741_v54 = vadd.f32 1e-05, %v725_v25  ;;  %v740_v34 = vadd.f32 1e-05, %v724_v26 }
 0x28e   : > { %v764_v41 = vmul.f32 %v1688_v28, %v2390_v9  ;;  %v709_v35 = vpop.xlane.xlu0 %708  ;;  %v706_v37 = vpop.xlane.xlu1 %705 }
 0x28f   : > { %v1201_v40 = vadd.f32 %v2479_v49, %v806_v30  ;;  %v787_v42 = vmul.f32 %v2481_v32, %v765_v31  ;;  %1701 = vrsqrt.f32 %v741_v54  ;;  %v727_v58 = vmul.f32 0.0625, %v709_v35 }
 0x290   : > { %v1690_v47 = vpop.eup %1689  ;;  %v786_v51 = vmul.f32 %v2481_v32, %v764_v41  ;;  %1703 = vrsqrt.f32 %v740_v34  ;;  %v726_v43 = vmul.f32 0.0625, %v706_v37 }
 0x291   : > { %v1692_v57 = vpop.eup %1691  ;;  %1217 = vst.msk [vmem:[%s2497_s4 + $0x8] sm:$0xff] %vm567_vm1, %v1201_v40  ;;  %v809_v9 = vadd.f32 %v2487_v36, %v787_v42  ;;  %v767_v52 = vmul.f32 %v1690_v47, %v2415_v50  ;;  %v743_v49 = vadd.f32 1e-05, %v727_v58 }
 0x292   : > { %v808_v59 = vadd.f32 %v2487_v36, %v786_v51  ;;  %v766_v62 = vmul.f32 %v1692_v57, %v2398_v16  ;;  %v742_v3 = vadd.f32 1e-05, %v726_v43  ;;  %v529_v4 = vpop.xlane.xlu0 %528  ;;  %v712_v6 = vpop.xlane.xlu1 %711 }
 0x293   : > { %v1204_v39 = vadd.f32 %v1141_v38, %v809_v9  ;;  %v789_v8 = vmul.f32 %v2481_v32, %v767_v52  ;;  %1705 = vrsqrt.f32 %v743_v49  ;;  %v530_v61 = vmul.f32 0.03125, %v529_v4  ;;  %v1465_v4 = vld [vmem:[#allocation8] ss:$0 sm:$0xff] }
 0x294   : > { %v1694_v60 = vpop.eup %1693  ;;  %v1203_v12 = vadd.f32 %v2492_v56, %v808_v59  ;;  %v788_v50 = vmul.f32 %v2481_v32, %v766_v62  ;;  %1707 = vrsqrt.f32 %v742_v3  ;;  %v728_v13 = vmul.f32 0.0625, %v712_v6 }
 0x295   : > { %v1696_v14 = vpop.eup %1695  ;;  %1220 = vst.msk [vmem:[%s2497_s4 + $0x20] sm:$0xff] %vm567_vm1, %v1204_v39  ;;  %v811_v16 = vadd.f32 %v2487_v36, %v789_v8  ;;  %v769_v15 = vmul.f32 %v1694_v60, %v2427_v33  ;;  %v531_v1 = vadd.f32 1e-05, %v530_v61  ;;  %v1466_v60 = vld [vmem:[#allocation10] ss:$0 sm:$0xff] }
 0x296   : > { %1219 = vst.msk [vmem:[%s2497_s4 + $0x18] sm:$0xff] %vm567_vm1, %v1203_v12  ;;  %v810_v56 = vadd.f32 %v2487_v36, %v788_v50  ;;  %v768_v19 = vmul.f32 %v1696_v14, %v2410_v24  ;;  %v744_v46 = vadd.f32 1e-05, %v728_v13  ;;  %v1171_v24 = vpop.f32.mrf.mxu1 }
 0x297   : > { %v1206_v20 = vadd.f32 %v1151_v18, %v811_v16  ;;  %v791_v21 = vmul.f32 %v2481_v32, %v769_v15  ;;  %1709 = vrsqrt.f32 %v531_v1 }
 0x298   : > { %v1698_v22 = vpop.eup %1697  ;;  %v1205_v23 = vadd.f32 %v1545_v7, %v810_v56  ;;  %v790_v33 = vmul.f32 %v2481_v32, %v768_v19  ;;  %1711 = vrsqrt.f32 %v744_v46  ;;  %v1557_v54 = vpop.f32.mrf.mxu1 }
 0x299   : > { %v1700_v45 = vpop.eup %1699  ;;  %1222 = vst.msk [vmem:[%s2497_s4 + $0x30] sm:$0xff] %vm567_vm1, %v1206_v20  ;;  %v813_v25 = vadd.f32 %v2487_v36, %v791_v21  ;;  %v771_v26 = vmul.f32 %v1698_v22, %v2439_v44 }
 0x29a   : > { %1221 = vst.msk [vmem:[%s2497_s4 + $0x28] sm:$0xff] %vm567_vm1, %v1205_v23  ;;  %v812_v27 = vadd.f32 %v2487_v36, %v790_v33  ;;  %v770_v28 = vmul.f32 %v1700_v45, %v2419_v29  ;;  %v1181_v47 = vpop.f32.mrf.mxu1 }
 0x29b   : > { %v1208_v7 = vadd.f32 %v1161_v11, %v813_v25  ;;  %v793_v30 = vmul.f32 %v2481_v32, %v771_v26 }
 0x29c   : > { %v1702_v31 = vpop.eup %1701  ;;  %v1207_v34 = vadd.f32 %v1548_v55, %v812_v27  ;;  %v792_v41 = vmul.f32 %v2481_v32, %v770_v28 }
 0x29d   : > { %v1704_v35 = vpop.eup %1703  ;;  %1224 = vst.msk [vmem:[%s2497_s4 + $0x40] sm:$0xff] %vm567_vm1, %v1208_v7  ;;  %v815_v44 = vadd.f32 %v2487_v36, %v793_v30  ;;  %v773_v37 = vmul.f32 %v1702_v31, %v2451_v0 }
 0x29e   : > { %1223 = vst.msk [vmem:[%s2497_s4 + $0x38] sm:$0xff] %vm567_vm1, %v1207_v34  ;;  %v814_v29 = vadd.f32 %v2487_v36, %v792_v41  ;;  %v772_v38 = vmul.f32 %v1704_v35, %v2431_v53  ;;  %v1560_v53 = vpop.f32.mrf.mxu1 }
 0x29f   : > { %v1210_v40 = vadd.f32 %v1171_v24, %v815_v44  ;;  %v795_v42 = vmul.f32 %v2481_v32, %v773_v37 }
 0x2a0   : > { %v1706_v58 = vpop.eup %1705  ;;  %v1209_v51 = vadd.f32 %v2511_v48, %v814_v29  ;;  %v794_v43 = vmul.f32 %v2481_v32, %v772_v38 }
 0x2a1   : > { %v1708_v57 = vpop.eup %1707  ;;  %1226 = vst.msk [vmem:[%s2497_s4 + $0x50] sm:$0xff] %vm567_vm1, %v1210_v40  ;;  %v817_v0 = vadd.f32 %v2487_v36, %v795_v42  ;;  %v775_v55 = vmul.f32 %v1706_v58, %v2463_v2 }
 0x2a2   : > { %1225 = vst.msk [vmem:[%s2497_s4 + $0x48] sm:$0xff] %vm567_vm1, %v1209_v51  ;;  %v816_v9 = vadd.f32 %v2487_v36, %v794_v43  ;;  %v774_v48 = vmul.f32 %v1708_v57, %v2448_v63  ;;  %v1191_v63 = vpop.f32.mrf.mxu1 }
 0x2a3   : > { %v1212_v52 = vadd.f32 %v1181_v47, %v817_v0  ;;  %v797_v49 = vmul.f32 %v2481_v32, %v775_v55 }
 0x2a4   : > { %v1710_v59 = vpop.eup %1709  ;;  %v1211_v62 = vadd.f32 %v1554_v5, %v816_v9  ;;  %v796_v3 = vmul.f32 %v2481_v32, %v774_v48 }
 0x2a5   : > { %v1712_v6 = vpop.eup %1711  ;;  %1228 = vst.msk [vmem:[%s2497_s4 + $0x60] sm:$0xff] %vm567_vm1, %v1212_v52  ;;  %v819_v2 = vadd.f32 %v2487_v36, %v797_v49  ;;  %v533_v39 = vmul.f32 %v1710_v59, %v2472_v17 }
 0x2a6   : > { %1227 = vst.msk [vmem:[%s2497_s4 + $0x58] sm:$0xff] %vm567_vm1, %v1211_v62  ;;  %v818_v8 = vadd.f32 %v2487_v36, %v796_v3  ;;  %v776_v61 = vmul.f32 %v1712_v6, %v2458_v10 }
 0x2a7   : > { %v1214_v11 = vadd.f32 %v1191_v63, %v819_v2  ;;  %v540_v12 = vmul.f32 %v1465_v4, %v533_v39 }
 0x2a8   : > { %v1213_v17 = vadd.f32 %v1557_v54, %v818_v8  ;;  %v798_v50 = vmul.f32 %v2481_v32, %v776_v61 }
 0x2a9   : > { %1230 = vst.msk [vmem:[%s2497_s4 + $0x70] sm:$0xff] %vm567_vm1, %v1214_v11  ;;  %v547_v10 = vadd.f32 %v1466_v60, %v540_v12 }
 0x2aa   : > { %1229 = vst.msk [vmem:[%s2497_s4 + $0x68] sm:$0xff] %vm567_vm1, %v1213_v17  ;;  %v820_v13 = vadd.f32 %v2487_v36, %v798_v50 }
 0x2ab   : > { %548 = vst.msk [vmem:[%s498_s27] sm:$0xff] %vm519_vm2, %v547_v10 }
 0x2ac   : > { %v1215_v32 = vadd.f32 %v1560_v53, %v820_v13 }
 0x2ad   : > { %1884 = shalt.err (!%p1881_p6)
}
 0x2ae   : > { %s1885_s27 = scalar_lea.hbm %s2580_s5, 128  ;;  %s1889_s23 = scalar_lea.hbm %s2671_s10, 256 }
 0x2af   : > { %p1886_p13 = scmp.ne.s32.totalorder %s2580_s5, %s1885_s27  ;;  %p1890_p9 = scmp.lt.s32.totalorder %s2580_s5, %s2671_s10 }
 0x2b0   : > { %p1891_p10 = scmp.lt.s32.totalorder %s1889_s23, %s1885_s27 }
 0x2b1   : > { %p1887_p0 = pnand %p1886_p13, %p2703_p3 }
 0x2b2   : > { %p1892_p11 = por %p1891_p10, %p1890_p9 }
 0x2b3   : > { %p1888_p8 = pneg %p1887_p0 }
 0x2b5   : > { %p1893_p12 = pnand %p1892_p11, %p1888_p8 }
 0x2b7   : > { %1896 = shalt.err (!%p1893_p12)
}
 0x2b8   : > { %1587 = dma.vmem_to_hbm [thread:$0]  (%p2703_p3), %s2584_s13, 128, %s2580_s5, %s1233_s16   ;;  %1231 = vst.msk [vmem:[%s2497_s4 + $0x78] sm:$0xff] %vm567_vm1, %v1215_v32 }
 0x2b9   : > { %s1238_s3 = scalar_lea.sflag [#allocation15], %s2214_s6  ;;  %s1897_s24 = scalar_lea.vmem %s2594_s26, 2048 }
 0x2ba   : > { %p1898_p4 = scmp.ne.s32.totalorder %s2594_s26, %s1897_s24  ;;  %s1992_s30 = smov [#allocation14]  }
 0x2bb   : > { %s1901_s27 = sshll.u32 %s1992_s30, 4  ;;  %s1902_s27 = int_to_ptr.vmem [resolvable:$false] %s1901_s27 }
 0x2bc   : > { %p1899_p2 = pnand %p1898_p4, %p2703_p3  ;;  %s1903_s12 = scalar_lea.vmem %s1902_s27, 4096 }
 0x2bd   : > { %p1904_p7 = scmp.lt.s32.totalorder %s2594_s26, %s1902_s27  ;;  %p1905_p1 = scmp.lt.s32.totalorder %s1903_s12, %s1897_s24 }
 0x2be   : > { %p1900_p5 = pneg %p1899_p2 }
 0x2bf   : > { %p1906_p6 = por %p1905_p1, %p1904_p7 }
 0x2c1   : > { %p1907_p13 = pnand %p1906_p6, %p1900_p5 }
 0x2c3   : > { %1910 = shalt.err (!%p1907_p13)
}
 0x2c4   : > { %s1911_s4 = scalar_lea.hbm %s2592_s28, 2048  ;;  %s1915_s16 = scalar_lea.hbm %s2672_s11, 4096 }
 0x2c5   : > { %p1912_p0 = scmp.ne.s32.totalorder %s2592_s28, %s1911_s4  ;;  %p1916_p10 = scmp.lt.s32.totalorder %s2592_s28, %s2672_s11 }
 0x2c6   : > { %p1917_p11 = scmp.lt.s32.totalorder %s1915_s16, %s1911_s4 }
 0x2c7   : > { %p1913_p8 = pnand %p1912_p0, %p2703_p3 }
 0x2c8   : > { %p1918_p12 = por %p1917_p11, %p1916_p10 }
 0x2c9   : > { %p1914_p9 = pneg %p1913_p8 }
 0x2cb   : > { %p1919_p4 = pnand %p1918_p12, %p1914_p9 }
 0x2cd   : > { %1922 = shalt.err (!%p1919_p4)
}
 0x2ce   : > { %s1993_s15 = smov 128   ;;  %s1994_s7 = smov 8  }
 0x2cf   : > { %1588 = dma.vmem_to_hbm [thread:$0]  (%p2703_p3), %s2594_s26, 2048, %s2592_s28, %s1238_s3, %s1993_s15, %s1993_s15, %s1994_s7  }
 0x2d0 PF: > { %s1280_s24 = sand.u32 1, %s1965_s17   ;;  %p2704_p2 = scmp.ne.s32.totalorder %s2693_s22, 0 }
 0x2d1   : > { %p2705_p5 = scmp.ge.s32.totalorder %s1977_s20, 2  ;;  %s1281_s30 = scalar_lea.sflag [#allocation4], %s1280_s24 }
 0x2d3   : > { %p1612_p7 = pnand %p2705_p5, %p2704_p2 }
 0x2d5   : > { %p1613_p1 = pneg %p1612_p7 }
 0x2d7   : > { %1956 = dma.done.wait (%p1613_p1), %s1281_s30, 128  }
 0x2d8   : > { %1958 = vsyncadd (%p1613_p1), %s1281_s30, 4294967168  ;;  %s1290_s27 = scalar_lea.sflag [#allocation15], %s1280_s24 }
 0x2d9   : > { %1960 = dma.done.wait (%p1613_p1), %s1290_s27, 2048  }
 0x2da   : > { %1962 = vsyncadd (%p1613_p1), %s1290_s27, 4294965248  ;;  %p31_p3 = scmp.ge.s32.totalorder %s2148_s29, 4   ;;  %s2706_s17 = smov %s1969_s18 }
 0x2db   : > { %s2707_s18 = smov %s1973_s19  ;;  %s2708_s19 = smov %s2160_s25 }
 0x2dc   : > { %s2709_s20 = smov %s2148_s29  ;;  %33 = sbr.rel (!%p31_p3) target bundleno = 16 (0x10), region = 148 }
 0x2e1   :  { %1295 = vsyncpa [#allocation3], 1 }
 0x2e2   :  { %1297 = vsyncpa [#allocation3 + $0x1], 1 }
 0x2e3   :  { %1298 = vsyncpa [#allocation6], 1 }
 0x2e4   :  { %1299 = vsyncpa [#allocation9], 1 }
 0x2e5   :  { %1300 = vsyncpa [#allocation12], 1 }
 0x2e6   :  { %1301 = vsyncpa [#allocation4], 1 }
 0x2e7   :  { %1303 = vsyncpa [#allocation4 + $0x1], 1 }
 0x2e8   :  { %1304 = vsyncpa [#allocation15], 1 }
 0x2e9   :  { %1306 = vsyncpa [#allocation15 + $0x1], 1 }

</bundles_post_ra>
